<compile_context>
chip_gen: v7x
topology: tpu7x:2x2x1
jax: 0.10.0
libtpu: 0.0.40
codegen_flags: <defaults>
</compile_context>

<pallas_src>
import math

import jax
import jax.numpy as jnp
import numpy as np
from jax.experimental import pallas as pl

# ---------------------------------------------------------------- hyper-params
N_GLIMPSES = 4
PIX_SIZE = 6
HIDDEN = 32
MAP_SIZE = 16
OUTPUT_SIZE = 4
BATCH = 8                        # one full sublane group

XY_IN = 2 * N_GLIMPSES           # 8
PIX_IN = PIX_SIZE * N_GLIMPSES   # 24
IN_TOTAL = XY_IN + PIX_IN        # 32
HALF = HIDDEN // 2               # 16

LANES = 128                      # lane-dense padded width of every activation
N_LAYERS = 12                    # 6 fused dorsal|ventral layers + 6 parietal

# LeakyReLU(0.1) after every layer except the final Linear of each FeedForward
# chain (fused layer-6 at index 5, parietal layer-6 at index 11).
_LRELU_AFTER = (True, True, True, True, True, False,
                True, True, True, True, True, False)
_PREMAP_IDX = 9    # parietal activation after layer4 (+ identity dropout)
_MAP_IDX = 10      # LReLU(parietal layer5)
_NUM_IDX = 11      # parietal layer6 output


# --------------------------------------------------------------------- kernel
def unserial_kernel(x_ref, w_ref, b_ref, out_ref):
    h = x_ref[...]                                        # (8, 128) = one vreg
    for i in range(N_LAYERS):                             # static unroll
        h = jnp.dot(h, w_ref[i], preferred_element_type=jnp.float32) + b_ref[i]
        if _LRELU_AFTER[i]:
            h = jnp.where(h > 0, h, 0.1 * h)
        if i == _PREMAP_IDX:
            out_ref[0, :, :] = h                          # premap (lanes 0:32)
        elif i == _MAP_IDX:
            out_ref[1, :, :] = h                          # map    (lanes 0:16)
        elif i == _NUM_IDX:
            out_ref[2, :, :] = h                          # num    (lanes 0:4)


def _unserial_forward(x, w_slab, b_slab):
    batch = x.shape[0]
    x_pad = jnp.zeros((batch, LANES), jnp.float32).at[:, :IN_TOTAL].set(x)
    out = pl.pallas_call(
        unserial_kernel,
        grid=(),
        in_specs=[
            pl.BlockSpec((batch, LANES), lambda: (0, 0)),
            pl.BlockSpec((N_LAYERS, LANES, LANES), lambda: (0, 0, 0)),
            pl.BlockSpec((N_LAYERS, 1, LANES), lambda: (0, 0, 0)),
        ],
        out_specs=pl.BlockSpec((3, batch, LANES), lambda: (0, 0, 0)),
        out_shape=jax.ShapeDtypeStruct((3, batch, LANES), jnp.float32),
    )(x_pad, w_slab, b_slab)
    premap = out[0, :, :HIDDEN]
    map_ = out[1, :, :MAP_SIZE]
    num = out[2, :, :OUTPUT_SIZE]
    return num, map_, premap


unserial_forward = jax.jit(_unserial_forward)


# ------------------------------------------------------- params: init + packing
def _init_linear(key, fan_in, fan_out):
    """PyTorch nn.Linear default init; weight stored transposed as (in, out)."""
    kw, kb = jax.random.split(key)
    bound = 1.0 / math.sqrt(fan_in)
    w = jax.random.uniform(kw, (fan_in, fan_out), jnp.float32, -bound, bound)
    b = jax.random.uniform(kb, (fan_out,), jnp.float32, -bound, bound)
    return w, b


def init_feedforward(key, in_size, hidden, map_size, out_size):
    dims = [(in_size, hidden), (hidden, hidden), (hidden, hidden),
            (hidden, hidden), (hidden, map_size), (map_size, out_size)]
    keys = jax.random.split(key, len(dims))
    return [_init_linear(k, i, o) for k, (i, o) in zip(keys, dims)]


def pack_slabs(dorsal, ventral, parietal):
    """Pack all 36 weight/bias arrays into one weight slab + one bias slab.

    Layer order (block-diagonal fusion of the parallel dorsal|ventral streams,
    dorsal in the low lanes, ventral in the high lanes):
      0..4 : fused dorsal/ventral layers 1..5 (LReLU)
      5    : fused dorsal/ventral layer 6     (no act) -> [dorsal_out|ventral_out]
      6..9 : parietal layers 1..4             (LReLU)  -> premap
      10   : parietal layer 5                 (LReLU)  -> map
      11   : parietal layer 6                 (no act) -> num
    """
    w_slab = np.zeros((N_LAYERS, LANES, LANES), np.float32)
    b_slab = np.zeros((N_LAYERS, 1, LANES), np.float32)

    def place(i, wb, r0, c0):
        w, b = np.asarray(wb[0]), np.asarray(wb[1])
        w_slab[i, r0:r0 + w.shape[0], c0:c0 + w.shape[1]] = w
        b_slab[i, 0, c0:c0 + b.shape[0]] = b

    # fused layer 1 acts on raw x = [xy(0:8) | pix(8:32) | zeros]
    place(0, dorsal[0], 0, 0)
    place(0, ventral[0], XY_IN, HIDDEN)
    for li in (1, 2, 3, 4):                      # fused layers 2..5 (32->32)
        place(li, dorsal[li], 0, 0)
        place(li, ventral[li], HIDDEN, HIDDEN)
    place(5, dorsal[5], 0, 0)                    # fused layer 6: output is
    place(5, ventral[5], HIDDEN, HALF)           #   [dorsal_out(16)|ventral_out(16)]
    for li in range(6):                          # parietal layers 1..6
        place(6 + li, parietal[li], 0, 0)

    return jnp.asarray(w_slab), jnp.asarray(b_slab)


# -------------------------------------------------------- pure-JAX reference
def _lrelu(v):
    return jnp.where(v > 0, v, 0.1 * v)


def feedforward_ref(x, layers):
    h = x
    for li in range(4):
        w, b = layers[li]
        h = _lrelu(h @ w + b)
    premap = h                        # Dropout: p=0 / eval mode -> identity
    w, b = layers[4]
    mp = _lrelu(premap @ w + b)
    w, b = layers[5]
    out = mp @ w + b
    return out, mp, premap


def unserial_ref(x, dorsal, ventral, parietal):
    xy = x[:, :XY_IN]
    pix = x[:, XY_IN:]
    ventral_out, _, _ = feedforward_ref(pix, ventral)
    dorsal_out, _, _ = feedforward_ref(xy, dorsal)
    parietal_in = jnp.concatenate([dorsal_out, ventral_out], axis=1)
    return feedforward_ref(parietal_in, parietal)    # (num, map, premap)


# ----------------------------------------------------------------------- main
if __name__ == "__main__":
    key = jax.random.PRNGKey(0)
    k_x, k_d, k_v, k_p = jax.random.split(key, 4)

    x = jax.random.normal(k_x, (BATCH, IN_TOTAL), jnp.float32)
    dorsal = init_feedforward(k_d, XY_IN, HIDDEN, HIDDEN, HALF)
    ventral = init_feedforward(k_v, PIX_IN, HIDDEN, HIDDEN, HALF)
    parietal = init_feedforward(k_p, HIDDEN, HIDDEN, MAP_SIZE, OUTPUT_SIZE)

    w_slab, b_slab = pack_slabs(dorsal, ventral, parietal)

    num, map_, premap = unserial_forward(x, w_slab, b_slab)
    jax.block_until_ready((num, map_, premap))

    assert num.shape == (BATCH, OUTPUT_SIZE)
    assert map_.shape == (BATCH, MAP_SIZE)
    assert premap.shape == (BATCH, HIDDEN)

    # correctness vs an unfused pure-JAX reference of the PyTorch module
    num_r, map_r, premap_r = unserial_ref(x, dorsal, ventral, parietal)
    np.testing.assert_allclose(np.asarray(num), np.asarray(num_r),
                               rtol=5e-2, atol=2e-2)
    np.testing.assert_allclose(np.asarray(map_), np.asarray(map_r),
                               rtol=5e-2, atol=2e-2)
    np.testing.assert_allclose(np.asarray(premap), np.asarray(premap_r),
                               rtol=5e-2, atol=2e-2)

    print("KERNEL_OK")
</pallas_src>

<mosaic_0001>
module attributes {stable_mosaic.version = 11 : i64} {
  func.func @unserial_kernel(%arg0: memref<8x128xf32, #tpu.memory_space<vmem>>, %arg1: memref<12x128x128xf32, #tpu.memory_space<vmem>>, %arg2: memref<12x1x128xf32, #tpu.memory_space<vmem>>, %arg3: memref<3x8x128xf32, #tpu.memory_space<vmem>>) attributes {dimension_semantics = [], scalar_prefetch = 0 : i64, scratch_operands = 0 : i64, tpu.core_type = #tpu.core_type<tc>} {
    %c0 = arith.constant 0 : index
    %c0_0 = arith.constant 0 : index
    %0 = vector.load %arg0[%c0, %c0_0] : memref<8x128xf32, #tpu.memory_space<vmem>>, vector<8x128xf32>
    %c0_1 = arith.constant 0 : index
    %c0_2 = arith.constant 0 : index
    %c0_3 = arith.constant 0 : index
    %1 = vector.load %arg1[%c0_1, %c0_2, %c0_3] : memref<12x128x128xf32, #tpu.memory_space<vmem>>, vector<1x128x128xf32>
    %2 = vector.shape_cast %1 : vector<1x128x128xf32> to vector<128x128xf32>
    %cst = arith.constant dense<0.000000e+00> : vector<8x128xf32>
    %3 = tpu.matmul %0, %2, %cst {dimension_numbers = #tpu.dot_dimension_numbers<[1], [0], [0], [1], [0, 0, 1, 1], [], []>} : vector<8x128xf32>, vector<128x128xf32>, vector<8x128xf32> -> vector<8x128xf32>
    %c0_4 = arith.constant 0 : index
    %c0_5 = arith.constant 0 : index
    %c0_6 = arith.constant 0 : index
    %4 = vector.load %arg2[%c0_4, %c0_5, %c0_6] : memref<12x1x128xf32, #tpu.memory_space<vmem>>, vector<1x1x128xf32>
    %5 = vector.shape_cast %4 : vector<1x1x128xf32> to vector<1x128xf32>
    %6 = vector.broadcast %5 : vector<1x128xf32> to vector<8x128xf32>
    %7 = arith.addf %3, %6 : vector<8x128xf32>
    %cst_7 = arith.constant 0.000000e+00 : f32
    %8 = vector.broadcast %cst_7 : f32 to vector<8x128xf32>
    %9 = arith.cmpf ogt, %7, %8 : vector<8x128xf32>
    %cst_8 = arith.constant 1.000000e-01 : f32
    %10 = vector.broadcast %cst_8 : f32 to vector<8x128xf32>
    %11 = arith.mulf %10, %7 : vector<8x128xf32>
    %12 = arith.select %9, %7, %11 : vector<8x128xi1>, vector<8x128xf32>
    %c1 = arith.constant 1 : index
    %c0_9 = arith.constant 0 : index
    %c0_10 = arith.constant 0 : index
    %13 = vector.load %arg1[%c1, %c0_9, %c0_10] : memref<12x128x128xf32, #tpu.memory_space<vmem>>, vector<1x128x128xf32>
    %14 = vector.shape_cast %13 : vector<1x128x128xf32> to vector<128x128xf32>
    %cst_11 = arith.constant dense<0.000000e+00> : vector<8x128xf32>
    %15 = tpu.matmul %12, %14, %cst_11 {dimension_numbers = #tpu.dot_dimension_numbers<[1], [0], [0], [1], [0, 0, 1, 1], [], []>} : vector<8x128xf32>, vector<128x128xf32>, vector<8x128xf32> -> vector<8x128xf32>
    %c1_12 = arith.constant 1 : index
    %c0_13 = arith.constant 0 : index
    %c0_14 = arith.constant 0 : index
    %16 = vector.load %arg2[%c1_12, %c0_13, %c0_14] : memref<12x1x128xf32, #tpu.memory_space<vmem>>, vector<1x1x128xf32>
    %17 = vector.shape_cast %16 : vector<1x1x128xf32> to vector<1x128xf32>
    %18 = vector.broadcast %17 : vector<1x128xf32> to vector<8x128xf32>
    %19 = arith.addf %15, %18 : vector<8x128xf32>
    %cst_15 = arith.constant 0.000000e+00 : f32
    %20 = vector.broadcast %cst_15 : f32 to vector<8x128xf32>
    %21 = arith.cmpf ogt, %19, %20 : vector<8x128xf32>
    %cst_16 = arith.constant 1.000000e-01 : f32
    %22 = vector.broadcast %cst_16 : f32 to vector<8x128xf32>
    %23 = arith.mulf %22, %19 : vector<8x128xf32>
    %24 = arith.select %21, %19, %23 : vector<8x128xi1>, vector<8x128xf32>
    %c2 = arith.constant 2 : index
    %c0_17 = arith.constant 0 : index
    %c0_18 = arith.constant 0 : index
    %25 = vector.load %arg1[%c2, %c0_17, %c0_18] : memref<12x128x128xf32, #tpu.memory_space<vmem>>, vector<1x128x128xf32>
    %26 = vector.shape_cast %25 : vector<1x128x128xf32> to vector<128x128xf32>
    %cst_19 = arith.constant dense<0.000000e+00> : vector<8x128xf32>
    %27 = tpu.matmul %24, %26, %cst_19 {dimension_numbers = #tpu.dot_dimension_numbers<[1], [0], [0], [1], [0, 0, 1, 1], [], []>} : vector<8x128xf32>, vector<128x128xf32>, vector<8x128xf32> -> vector<8x128xf32>
    %c2_20 = arith.constant 2 : index
    %c0_21 = arith.constant 0 : index
    %c0_22 = arith.constant 0 : index
    %28 = vector.load %arg2[%c2_20, %c0_21, %c0_22] : memref<12x1x128xf32, #tpu.memory_space<vmem>>, vector<1x1x128xf32>
    %29 = vector.shape_cast %28 : vector<1x1x128xf32> to vector<1x128xf32>
    %30 = vector.broadcast %29 : vector<1x128xf32> to vector<8x128xf32>
    %31 = arith.addf %27, %30 : vector<8x128xf32>
    %cst_23 = arith.constant 0.000000e+00 : f32
    %32 = vector.broadcast %cst_23 : f32 to vector<8x128xf32>
    %33 = arith.cmpf ogt, %31, %32 : vector<8x128xf32>
    %cst_24 = arith.constant 1.000000e-01 : f32
    %34 = vector.broadcast %cst_24 : f32 to vector<8x128xf32>
    %35 = arith.mulf %34, %31 : vector<8x128xf32>
    %36 = arith.select %33, %31, %35 : vector<8x128xi1>, vector<8x128xf32>
    %c3 = arith.constant 3 : index
    %c0_25 = arith.constant 0 : index
    %c0_26 = arith.constant 0 : index
    %37 = vector.load %arg1[%c3, %c0_25, %c0_26] : memref<12x128x128xf32, #tpu.memory_space<vmem>>, vector<1x128x128xf32>
    %38 = vector.shape_cast %37 : vector<1x128x128xf32> to vector<128x128xf32>
    %cst_27 = arith.constant dense<0.000000e+00> : vector<8x128xf32>
    %39 = tpu.matmul %36, %38, %cst_27 {dimension_numbers = #tpu.dot_dimension_numbers<[1], [0], [0], [1], [0, 0, 1, 1], [], []>} : vector<8x128xf32>, vector<128x128xf32>, vector<8x128xf32> -> vector<8x128xf32>
    %c3_28 = arith.constant 3 : index
    %c0_29 = arith.constant 0 : index
    %c0_30 = arith.constant 0 : index
    %40 = vector.load %arg2[%c3_28, %c0_29, %c0_30] : memref<12x1x128xf32, #tpu.memory_space<vmem>>, vector<1x1x128xf32>
    %41 = vector.shape_cast %40 : vector<1x1x128xf32> to vector<1x128xf32>
    %42 = vector.broadcast %41 : vector<1x128xf32> to vector<8x128xf32>
    %43 = arith.addf %39, %42 : vector<8x128xf32>
    %cst_31 = arith.constant 0.000000e+00 : f32
    %44 = vector.broadcast %cst_31 : f32 to vector<8x128xf32>
    %45 = arith.cmpf ogt, %43, %44 : vector<8x128xf32>
    %cst_32 = arith.constant 1.000000e-01 : f32
    %46 = vector.broadcast %cst_32 : f32 to vector<8x128xf32>
    %47 = arith.mulf %46, %43 : vector<8x128xf32>
    %48 = arith.select %45, %43, %47 : vector<8x128xi1>, vector<8x128xf32>
    %c4 = arith.constant 4 : index
    %c0_33 = arith.constant 0 : index
    %c0_34 = arith.constant 0 : index
    %49 = vector.load %arg1[%c4, %c0_33, %c0_34] : memref<12x128x128xf32, #tpu.memory_space<vmem>>, vector<1x128x128xf32>
    %50 = vector.shape_cast %49 : vector<1x128x128xf32> to vector<128x128xf32>
    %cst_35 = arith.constant dense<0.000000e+00> : vector<8x128xf32>
    %51 = tpu.matmul %48, %50, %cst_35 {dimension_numbers = #tpu.dot_dimension_numbers<[1], [0], [0], [1], [0, 0, 1, 1], [], []>} : vector<8x128xf32>, vector<128x128xf32>, vector<8x128xf32> -> vector<8x128xf32>
    %c4_36 = arith.constant 4 : index
    %c0_37 = arith.constant 0 : index
    %c0_38 = arith.constant 0 : index
    %52 = vector.load %arg2[%c4_36, %c0_37, %c0_38] : memref<12x1x128xf32, #tpu.memory_space<vmem>>, vector<1x1x128xf32>
    %53 = vector.shape_cast %52 : vector<1x1x128xf32> to vector<1x128xf32>
    %54 = vector.broadcast %53 : vector<1x128xf32> to vector<8x128xf32>
    %55 = arith.addf %51, %54 : vector<8x128xf32>
    %cst_39 = arith.constant 0.000000e+00 : f32
    %56 = vector.broadcast %cst_39 : f32 to vector<8x128xf32>
    %57 = arith.cmpf ogt, %55, %56 : vector<8x128xf32>
    %cst_40 = arith.constant 1.000000e-01 : f32
    %58 = vector.broadcast %cst_40 : f32 to vector<8x128xf32>
    %59 = arith.mulf %58, %55 : vector<8x128xf32>
    %60 = arith.select %57, %55, %59 : vector<8x128xi1>, vector<8x128xf32>
    %c5 = arith.constant 5 : index
    %c0_41 = arith.constant 0 : index
    %c0_42 = arith.constant 0 : index
    %61 = vector.load %arg1[%c5, %c0_41, %c0_42] : memref<12x128x128xf32, #tpu.memory_space<vmem>>, vector<1x128x128xf32>
    %62 = vector.shape_cast %61 : vector<1x128x128xf32> to vector<128x128xf32>
    %cst_43 = arith.constant dense<0.000000e+00> : vector<8x128xf32>
    %63 = tpu.matmul %60, %62, %cst_43 {dimension_numbers = #tpu.dot_dimension_numbers<[1], [0], [0], [1], [0, 0, 1, 1], [], []>} : vector<8x128xf32>, vector<128x128xf32>, vector<8x128xf32> -> vector<8x128xf32>
    %c5_44 = arith.constant 5 : index
    %c0_45 = arith.constant 0 : index
    %c0_46 = arith.constant 0 : index
    %64 = vector.load %arg2[%c5_44, %c0_45, %c0_46] : memref<12x1x128xf32, #tpu.memory_space<vmem>>, vector<1x1x128xf32>
    %65 = vector.shape_cast %64 : vector<1x1x128xf32> to vector<1x128xf32>
    %66 = vector.broadcast %65 : vector<1x128xf32> to vector<8x128xf32>
    %67 = arith.addf %63, %66 : vector<8x128xf32>
    %c6 = arith.constant 6 : index
    %c0_47 = arith.constant 0 : index
    %c0_48 = arith.constant 0 : index
    %68 = vector.load %arg1[%c6, %c0_47, %c0_48] : memref<12x128x128xf32, #tpu.memory_space<vmem>>, vector<1x128x128xf32>
    %69 = vector.shape_cast %68 : vector<1x128x128xf32> to vector<128x128xf32>
    %cst_49 = arith.constant dense<0.000000e+00> : vector<8x128xf32>
    %70 = tpu.matmul %67, %69, %cst_49 {dimension_numbers = #tpu.dot_dimension_numbers<[1], [0], [0], [1], [0, 0, 1, 1], [], []>} : vector<8x128xf32>, vector<128x128xf32>, vector<8x128xf32> -> vector<8x128xf32>
    %c6_50 = arith.constant 6 : index
    %c0_51 = arith.constant 0 : index
    %c0_52 = arith.constant 0 : index
    %71 = vector.load %arg2[%c6_50, %c0_51, %c0_52] : memref<12x1x128xf32, #tpu.memory_space<vmem>>, vector<1x1x128xf32>
    %72 = vector.shape_cast %71 : vector<1x1x128xf32> to vector<1x128xf32>
    %73 = vector.broadcast %72 : vector<1x128xf32> to vector<8x128xf32>
    %74 = arith.addf %70, %73 : vector<8x128xf32>
    %cst_53 = arith.constant 0.000000e+00 : f32
    %75 = vector.broadcast %cst_53 : f32 to vector<8x128xf32>
    %76 = arith.cmpf ogt, %74, %75 : vector<8x128xf32>
    %cst_54 = arith.constant 1.000000e-01 : f32
    %77 = vector.broadcast %cst_54 : f32 to vector<8x128xf32>
    %78 = arith.mulf %77, %74 : vector<8x128xf32>
    %79 = arith.select %76, %74, %78 : vector<8x128xi1>, vector<8x128xf32>
    %c7 = arith.constant 7 : index
    %c0_55 = arith.constant 0 : index
    %c0_56 = arith.constant 0 : index
    %80 = vector.load %arg1[%c7, %c0_55, %c0_56] : memref<12x128x128xf32, #tpu.memory_space<vmem>>, vector<1x128x128xf32>
    %81 = vector.shape_cast %80 : vector<1x128x128xf32> to vector<128x128xf32>
    %cst_57 = arith.constant dense<0.000000e+00> : vector<8x128xf32>
    %82 = tpu.matmul %79, %81, %cst_57 {dimension_numbers = #tpu.dot_dimension_numbers<[1], [0], [0], [1], [0, 0, 1, 1], [], []>} : vector<8x128xf32>, vector<128x128xf32>, vector<8x128xf32> -> vector<8x128xf32>
    %c7_58 = arith.constant 7 : index
    %c0_59 = arith.constant 0 : index
    %c0_60 = arith.constant 0 : index
    %83 = vector.load %arg2[%c7_58, %c0_59, %c0_60] : memref<12x1x128xf32, #tpu.memory_space<vmem>>, vector<1x1x128xf32>
    %84 = vector.shape_cast %83 : vector<1x1x128xf32> to vector<1x128xf32>
    %85 = vector.broadcast %84 : vector<1x128xf32> to vector<8x128xf32>
    %86 = arith.addf %82, %85 : vector<8x128xf32>
    %cst_61 = arith.constant 0.000000e+00 : f32
    %87 = vector.broadcast %cst_61 : f32 to vector<8x128xf32>
    %88 = arith.cmpf ogt, %86, %87 : vector<8x128xf32>
    %cst_62 = arith.constant 1.000000e-01 : f32
    %89 = vector.broadcast %cst_62 : f32 to vector<8x128xf32>
    %90 = arith.mulf %89, %86 : vector<8x128xf32>
    %91 = arith.select %88, %86, %90 : vector<8x128xi1>, vector<8x128xf32>
    %c8 = arith.constant 8 : index
    %c0_63 = arith.constant 0 : index
    %c0_64 = arith.constant 0 : index
    %92 = vector.load %arg1[%c8, %c0_63, %c0_64] : memref<12x128x128xf32, #tpu.memory_space<vmem>>, vector<1x128x128xf32>
    %93 = vector.shape_cast %92 : vector<1x128x128xf32> to vector<128x128xf32>
    %cst_65 = arith.constant dense<0.000000e+00> : vector<8x128xf32>
    %94 = tpu.matmul %91, %93, %cst_65 {dimension_numbers = #tpu.dot_dimension_numbers<[1], [0], [0], [1], [0, 0, 1, 1], [], []>} : vector<8x128xf32>, vector<128x128xf32>, vector<8x128xf32> -> vector<8x128xf32>
    %c8_66 = arith.constant 8 : index
    %c0_67 = arith.constant 0 : index
    %c0_68 = arith.constant 0 : index
    %95 = vector.load %arg2[%c8_66, %c0_67, %c0_68] : memref<12x1x128xf32, #tpu.memory_space<vmem>>, vector<1x1x128xf32>
    %96 = vector.shape_cast %95 : vector<1x1x128xf32> to vector<1x128xf32>
    %97 = vector.broadcast %96 : vector<1x128xf32> to vector<8x128xf32>
    %98 = arith.addf %94, %97 : vector<8x128xf32>
    %cst_69 = arith.constant 0.000000e+00 : f32
    %99 = vector.broadcast %cst_69 : f32 to vector<8x128xf32>
    %100 = arith.cmpf ogt, %98, %99 : vector<8x128xf32>
    %cst_70 = arith.constant 1.000000e-01 : f32
    %101 = vector.broadcast %cst_70 : f32 to vector<8x128xf32>
    %102 = arith.mulf %101, %98 : vector<8x128xf32>
    %103 = arith.select %100, %98, %102 : vector<8x128xi1>, vector<8x128xf32>
    %c9 = arith.constant 9 : index
    %c0_71 = arith.constant 0 : index
    %c0_72 = arith.constant 0 : index
    %104 = vector.load %arg1[%c9, %c0_71, %c0_72] : memref<12x128x128xf32, #tpu.memory_space<vmem>>, vector<1x128x128xf32>
    %105 = vector.shape_cast %104 : vector<1x128x128xf32> to vector<128x128xf32>
    %cst_73 = arith.constant dense<0.000000e+00> : vector<8x128xf32>
    %106 = tpu.matmul %103, %105, %cst_73 {dimension_numbers = #tpu.dot_dimension_numbers<[1], [0], [0], [1], [0, 0, 1, 1], [], []>} : vector<8x128xf32>, vector<128x128xf32>, vector<8x128xf32> -> vector<8x128xf32>
    %c9_74 = arith.constant 9 : index
    %c0_75 = arith.constant 0 : index
    %c0_76 = arith.constant 0 : index
    %107 = vector.load %arg2[%c9_74, %c0_75, %c0_76] : memref<12x1x128xf32, #tpu.memory_space<vmem>>, vector<1x1x128xf32>
    %108 = vector.shape_cast %107 : vector<1x1x128xf32> to vector<1x128xf32>
    %109 = vector.broadcast %108 : vector<1x128xf32> to vector<8x128xf32>
    %110 = arith.addf %106, %109 : vector<8x128xf32>
    %cst_77 = arith.constant 0.000000e+00 : f32
    %111 = vector.broadcast %cst_77 : f32 to vector<8x128xf32>
    %112 = arith.cmpf ogt, %110, %111 : vector<8x128xf32>
    %cst_78 = arith.constant 1.000000e-01 : f32
    %113 = vector.broadcast %cst_78 : f32 to vector<8x128xf32>
    %114 = arith.mulf %113, %110 : vector<8x128xf32>
    %115 = arith.select %112, %110, %114 : vector<8x128xi1>, vector<8x128xf32>
    %c0_79 = arith.constant 0 : index
    %c0_80 = arith.constant 0 : index
    %c0_81 = arith.constant 0 : index
    %116 = vector.load %arg3[%c0_79, %c0_80, %c0_81] : memref<3x8x128xf32, #tpu.memory_space<vmem>>, vector<1x8x128xf32>
    %117 = vector.shape_cast %116 : vector<1x8x128xf32> to vector<8x128xf32>
    %118 = vector.shape_cast %115 : vector<8x128xf32> to vector<1x8x128xf32>
    tpu.vector_store %arg3[%c0_79, %c0_80, %c0_81], %118 {strides = array<i32>} : memref<3x8x128xf32, #tpu.memory_space<vmem>>, vector<1x8x128xf32>,
    %c10 = arith.constant 10 : index
    %c0_82 = arith.constant 0 : index
    %c0_83 = arith.constant 0 : index
    %119 = vector.load %arg1[%c10, %c0_82, %c0_83] : memref<12x128x128xf32, #tpu.memory_space<vmem>>, vector<1x128x128xf32>
    %120 = vector.shape_cast %119 : vector<1x128x128xf32> to vector<128x128xf32>
    %cst_84 = arith.constant dense<0.000000e+00> : vector<8x128xf32>
    %121 = tpu.matmul %115, %120, %cst_84 {dimension_numbers = #tpu.dot_dimension_numbers<[1], [0], [0], [1], [0, 0, 1, 1], [], []>} : vector<8x128xf32>, vector<128x128xf32>, vector<8x128xf32> -> vector<8x128xf32>
    %c10_85 = arith.constant 10 : index
    %c0_86 = arith.constant 0 : index
    %c0_87 = arith.constant 0 : index
    %122 = vector.load %arg2[%c10_85, %c0_86, %c0_87] : memref<12x1x128xf32, #tpu.memory_space<vmem>>, vector<1x1x128xf32>
    %123 = vector.shape_cast %122 : vector<1x1x128xf32> to vector<1x128xf32>
    %124 = vector.broadcast %123 : vector<1x128xf32> to vector<8x128xf32>
    %125 = arith.addf %121, %124 : vector<8x128xf32>
    %cst_88 = arith.constant 0.000000e+00 : f32
    %126 = vector.broadcast %cst_88 : f32 to vector<8x128xf32>
    %127 = arith.cmpf ogt, %125, %126 : vector<8x128xf32>
    %cst_89 = arith.constant 1.000000e-01 : f32
    %128 = vector.broadcast %cst_89 : f32 to vector<8x128xf32>
    %129 = arith.mulf %128, %125 : vector<8x128xf32>
    %130 = arith.select %127, %125, %129 : vector<8x128xi1>, vector<8x128xf32>
    %c1_90 = arith.constant 1 : index
    %c0_91 = arith.constant 0 : index
    %c0_92 = arith.constant 0 : index
    %131 = vector.load %arg3[%c1_90, %c0_91, %c0_92] : memref<3x8x128xf32, #tpu.memory_space<vmem>>, vector<1x8x128xf32>
    %132 = vector.shape_cast %131 : vector<1x8x128xf32> to vector<8x128xf32>
    %133 = vector.shape_cast %130 : vector<8x128xf32> to vector<1x8x128xf32>
    tpu.vector_store %arg3[%c1_90, %c0_91, %c0_92], %133 {strides = array<i32>} : memref<3x8x128xf32, #tpu.memory_space<vmem>>, vector<1x8x128xf32>,
    %c11 = arith.constant 11 : index
    %c0_93 = arith.constant 0 : index
    %c0_94 = arith.constant 0 : index
    %134 = vector.load %arg1[%c11, %c0_93, %c0_94] : memref<12x128x128xf32, #tpu.memory_space<vmem>>, vector<1x128x128xf32>
    %135 = vector.shape_cast %134 : vector<1x128x128xf32> to vector<128x128xf32>
    %cst_95 = arith.constant dense<0.000000e+00> : vector<8x128xf32>
    %136 = tpu.matmul %130, %135, %cst_95 {dimension_numbers = #tpu.dot_dimension_numbers<[1], [0], [0], [1], [0, 0, 1, 1], [], []>} : vector<8x128xf32>, vector<128x128xf32>, vector<8x128xf32> -> vector<8x128xf32>
    %c11_96 = arith.constant 11 : index
    %c0_97 = arith.constant 0 : index
    %c0_98 = arith.constant 0 : index
    %137 = vector.load %arg2[%c11_96, %c0_97, %c0_98] : memref<12x1x128xf32, #tpu.memory_space<vmem>>, vector<1x1x128xf32>
    %138 = vector.shape_cast %137 : vector<1x1x128xf32> to vector<1x128xf32>
    %139 = vector.broadcast %138 : vector<1x128xf32> to vector<8x128xf32>
    %140 = arith.addf %136, %139 : vector<8x128xf32>
    %c2_99 = arith.constant 2 : index
    %c0_100 = arith.constant 0 : index
    %c0_101 = arith.constant 0 : index
    %141 = vector.load %arg3[%c2_99, %c0_100, %c0_101] : memref<3x8x128xf32, #tpu.memory_space<vmem>>, vector<1x8x128xf32>
    %142 = vector.shape_cast %141 : vector<1x8x128xf32> to vector<8x128xf32>
    %143 = vector.shape_cast %140 : vector<8x128xf32> to vector<1x8x128xf32>
    tpu.vector_store %arg3[%c2_99, %c0_100, %c0_101], %143 {strides = array<i32>} : memref<3x8x128xf32, #tpu.memory_space<vmem>>, vector<1x8x128xf32>,
    return
  }
}

</mosaic_0001>

<bundles_post_ra>
// kernel: _unserial_forward.1
= control target key start
LH: loop header
LB: loop body
LE: loop exit
PB: predicated region body
PF: predicated region fallthrough
CT: control target
= control target key end

     0   :  { %8 = vsyncpa [#allocation3], 0  ;;  %s2174_s12 = smov [#allocation2]   ;;  %s2380_s0 = inlined_call_operand.vmem [shape: f32[8,128], index: 0, kind: input, shape index: {}]   ;;  %s2381_s1 = inlined_call_operand.hbm [shape: f32[12,128,128], index: 1, kind: input, shape index: {}]   ;;  %s2382_s2 = inlined_call_operand.vmem [shape: f32[12,1,128], index: 2, kind: input, shape index: {}]   ;;  %s2383_s3 = inlined_call_operand.vmem [shape: f32[3,8,128], index: 3, kind: output, shape index: {}]  }
   0x1   :  { %s16_s13 = sshll.u32 %s2174_s12, 4  ;;  %s2150_s16 = scalar_lea.hbm %s2381_s1, 24576  ;;  %s17_s13 = int_to_ptr.vmem [resolvable:$true] %s16_s13 }
   0x2   :  { %p2151_p0 = scmp.ne.s32.totalorder %s2381_s1, %s2150_s16  ;;  %p2154_p1 = scmp.lt.u32.totalorder %s2150_s16, %s2381_s1 }
   0x4   :  { %p2156_p2 = pnand %p2154_p1, %p2151_p0 }
   0x6   :  { %2159 = shalt.err (!%p2156_p2)
}
   0x7   :  { %s2160_s21 = scalar_lea.vmem %s17_s13, 24576  ;;  %p2165_p4 = scmp.lt.s32.totalorder %s17_s13, %s17_s13 }
   0x8   :  { %p2161_p3 = scmp.ne.s32.totalorder %s17_s13, %s2160_s21  ;;  %p2166_p5 = scmp.lt.s32.totalorder %s2160_s21, %s2160_s21 }
   0xa   :  { %p2167_p6 = por %p2166_p5, %p2165_p4 }
   0xc   :  { %p2168_p7 = pnand %p2167_p6, %p2161_p3 }
   0xe   :  { %2171 = shalt.err (!%p2168_p7)
}
   0xf   :  { %s2175_s22 = smov 128   ;;  %s2176_s23 = smov 8  }
  0x10   :  { %22 = dma.hbm_to_vmem [thread:$0]  %s2381_s1, 24576, %s17_s13, [#allocation3], %s2175_s22, %s2175_s22, %s2176_s23  }
  0x11   :  { %2172 = dma.done.wait [#allocation3], 24576  }
  0x12   :  { %2173 = vsyncadd [#allocation3], 4294942720  ;;  %v2177_v0 = vmov 0.0|0.0   ;;  %vm2178_vm0 = vmmov 0   ;;  %v2179_v1 = vmov 0.0   ;;  %v29_v2 = vld [vmem:[#allocation2] sm:$0xff] }
  0x13   :  { %1856 = vmatprep.subr.bf16.mxu0 %v2177_v0  ;;  %1468 = vmatprep.mubr.msk.f32.mxu0 %vm2178_vm0, %v2179_v1  ;;  %v30_v3 = vld [vmem:[#allocation2 + $0x8] sm:$0xff]  ;;  %v31_v4 = vld [vmem:[#allocation2 + $0x10] sm:$0xff]  ;;  %v32_v6 = vld [vmem:[#allocation2 + $0x18] sm:$0xff] }
  0x14   :  { %1880 = vmatprep.subr.bf16.mxu1 %v2177_v0  ;;  %1503 = vmatprep.mubr.msk.f32.mxu1 %vm2178_vm0, %v2179_v1  ;;  %v1857_v5 = vpack.c.bf16 %v30_v3, %v29_v2  ;;  %v1860_v7 = vpack.c.bf16 %v32_v6, %v31_v4  ;;  %v33_v8 = vld [vmem:[#allocation2 + $0x20] sm:$0xff]  ;;  %v34_v9 = vld [vmem:[#allocation2 + $0x28] sm:$0xff]  ;;  %v128_v12 = vld [vmem:[#allocation2 + $0x90] sm:$0xff] }
  0x15   :  { %v126_v10 = vld [vmem:[#allocation2 + $0x80] sm:$0xff]  ;;  %v127_v11 = vld [vmem:[#allocation2 + $0x88] sm:$0xff]  ;;  %v129_v13 = vld [vmem:[#allocation2 + $0x98] sm:$0xff]  ;;  %v1863_v14 = vpack.c.bf16 %v34_v9, %v33_v8 }
  0x16   :  { %1858 = vmatpush3.bf16.msra.mxu0 %v1857_v5  ;;  %v1881_v15 = vpack.c.bf16 %v127_v11, %v126_v10  ;;  %v35_v16 = vld [vmem:[#allocation2 + $0x30] sm:$0xff]  ;;  %v36_v17 = vld [vmem:[#allocation2 + $0x38] sm:$0xff]  ;;  %v1884_v18 = vpack.c.bf16 %v129_v13, %v128_v12  ;;  %v130_v19 = vld [vmem:[#allocation2 + $0xa0] sm:$0xff] }
  0x17   :  { %1859 = vmatprep.subr.bf16.mxu0 %v2177_v0  ;;  %v131_v20 = vld [vmem:[#allocation2 + $0xa8] sm:$0xff]  ;;  %v1866_v21 = vpack.c.bf16 %v36_v17, %v35_v16  ;;  %v37_v22 = vld [vmem:[#allocation2 + $0x40] sm:$0xff]  ;;  %v132_v25 = vld [vmem:[#allocation2 + $0xb0] sm:$0xff] }
  0x18   :  { %1882 = vmatpush3.bf16.msra.mxu1 %v1881_v15  ;;  %v38_v23 = vld [vmem:[#allocation2 + $0x48] sm:$0xff]  ;;  %v1887_v24 = vpack.c.bf16 %v131_v20, %v130_v19  ;;  %v133_v26 = vld [vmem:[#allocation2 + $0xb8] sm:$0xff]  ;;  %v39_v28 = vld [vmem:[#allocation2 + $0x50] sm:$0xff] }
  0x19   :  { %1883 = vmatprep.subr.bf16.mxu1 %v2177_v0  ;;  %v1869_v27 = vpack.c.bf16 %v38_v23, %v37_v22  ;;  %v40_v29 = vld [vmem:[#allocation2 + $0x58] sm:$0xff]  ;;  %v1890_v30 = vpack.c.bf16 %v133_v26, %v132_v25  ;;  %v134_v31 = vld [vmem:[#allocation2 + $0xc0] sm:$0xff]  ;;  %v135_v32 = vld [vmem:[#allocation2 + $0xc8] sm:$0xff] }
  0x1a   :  { %1861 = vmatpush3.bf16.msra.mxu0 %v1860_v7  ;;  %v1872_v33 = vpack.c.bf16 %v40_v29, %v39_v28  ;;  %v41_v34 = vld [vmem:[#allocation2 + $0x60] sm:$0xff]  ;;  %v42_v35 = vld [vmem:[#allocation2 + $0x68] sm:$0xff]  ;;  %v1893_v36 = vpack.c.bf16 %v135_v32, %v134_v31  ;;  %v136_v37 = vld [vmem:[#allocation2 + $0xd0] sm:$0xff] }
  0x1b   :  { %1862 = vmatprep.subr.bf16.mxu0 %v2177_v0  ;;  %v137_v38 = vld [vmem:[#allocation2 + $0xd8] sm:$0xff]  ;;  %v1875_v39 = vpack.c.bf16 %v42_v35, %v41_v34  ;;  %v43_v40 = vld [vmem:[#allocation2 + $0x70] sm:$0xff]  ;;  %v138_v43 = vld [vmem:[#allocation2 + $0xe0] sm:$0xff] }
  0x1c   :  { %1885 = vmatpush3.bf16.msra.mxu1 %v1884_v18  ;;  %v44_v41 = vld [vmem:[#allocation2 + $0x78] sm:$0xff]  ;;  %v1896_v42 = vpack.c.bf16 %v137_v38, %v136_v37  ;;  %v139_v44 = vld [vmem:[#allocation2 + $0xe8] sm:$0xff]  ;;  %v28_v47 = vld [vmem:[%s2380_s0] sm:$0xff] }
  0x1d   :  { %1886 = vmatprep.subr.bf16.mxu1 %v2177_v0  ;;  %v1878_v45 = vpack.c.bf16 %v44_v41, %v43_v40  ;;  %v1899_v46 = vpack.c.bf16 %v139_v44, %v138_v43  ;;  %v140_v48 = vld [vmem:[#allocation2 + $0xf0] sm:$0xff]  ;;  %v141_v49 = vld [vmem:[#allocation2 + $0xf8] sm:$0xff]  ;;  %v224_v51 = vld [vmem:[#allocation2 + $0x100] sm:$0xff] }
  0x1e   :  { %1864 = vmatpush3.bf16.msra.mxu0 %v1863_v14  ;;  %v1902_v50 = vpack.c.bf16 %v141_v49, %v140_v48  ;;  %v225_v52 = vld [vmem:[#allocation2 + $0x108] sm:$0xff]  ;;  %v226_v53 = vld [vmem:[#allocation2 + $0x110] sm:$0xff]  ;;  %v227_v55 = vld [vmem:[#allocation2 + $0x118] sm:$0xff] }
  0x1f   :  { %1865 = vmatprep.subr.bf16.mxu0 %v2177_v0  ;;  %v1905_v54 = vpack.c.bf16 %v225_v52, %v224_v51  ;;  %v1908_v56 = vpack.c.bf16 %v227_v55, %v226_v53  ;;  %v228_v57 = vld [vmem:[#allocation2 + $0x120] sm:$0xff]  ;;  %v229_v58 = vld [vmem:[#allocation2 + $0x128] sm:$0xff]  ;;  %v230_v60 = vld [vmem:[#allocation2 + $0x130] sm:$0xff] }
  0x20   :  { %1888 = vmatpush3.bf16.msra.mxu1 %v1887_v24  ;;  %v1911_v59 = vpack.c.bf16 %v229_v58, %v228_v57  ;;  %v231_v61 = vld [vmem:[#allocation2 + $0x138] sm:$0xff]  ;;  %v232_v63 = vld [vmem:[#allocation2 + $0x140] sm:$0xff]  ;;  %v233_v2 = vld [vmem:[#allocation2 + $0x148] sm:$0xff] }
  0x21   :  { %1889 = vmatprep.subr.bf16.mxu1 %v2177_v0  ;;  %v1914_v62 = vpack.c.bf16 %v231_v61, %v230_v60  ;;  %v1917_v3 = vpack.c.bf16 %v233_v2, %v232_v63  ;;  %v234_v4 = vld [vmem:[#allocation2 + $0x150] sm:$0xff]  ;;  %v235_v5 = vld [vmem:[#allocation2 + $0x158] sm:$0xff]  ;;  %v236_v7 = vld [vmem:[#allocation2 + $0x160] sm:$0xff] }
  0x22   :  { %1867 = vmatpush3.bf16.msra.mxu0 %v1866_v21  ;;  %v1920_v6 = vpack.c.bf16 %v235_v5, %v234_v4  ;;  %v237_v8 = vld [vmem:[#allocation2 + $0x168] sm:$0xff]  ;;  %v1207_v10 = vld [vmem:[%s2382_s2] ss:$0 sm:$0xff]  ;;  %v238_v16 = vld [vmem:[#allocation2 + $0x170] sm:$0xff] }
  0x23   :  { %1868 = vmatprep.subr.bf16.mxu0 %v2177_v0  ;;  %v1923_v9 = vpack.c.bf16 %v237_v8, %v236_v7  ;;  %v239_v17 = vld [vmem:[#allocation2 + $0x178] sm:$0xff]  ;;  %v322_v19 = vld [vmem:[#allocation2 + $0x180] sm:$0xff]  ;;  %v323_v20 = vld [vmem:[#allocation2 + $0x188] sm:$0xff] }
  0x24   :  { %1891 = vmatpush3.bf16.msra.mxu1 %v1890_v30  ;;  %v1926_v18 = vpack.c.bf16 %v239_v17, %v238_v16  ;;  %v324_v21 = vld [vmem:[#allocation2 + $0x190] sm:$0xff]  ;;  %v1929_v22 = vpack.c.bf16 %v323_v20, %v322_v19  ;;  %v325_v23 = vld [vmem:[#allocation2 + $0x198] sm:$0xff]  ;;  %v326_v25 = vld [vmem:[#allocation2 + $0x1a0] sm:$0xff] }
  0x25   :  { %1892 = vmatprep.subr.bf16.mxu1 %v2177_v0  ;;  %v1932_v24 = vpack.c.bf16 %v325_v23, %v324_v21  ;;  %v327_v26 = vld [vmem:[#allocation2 + $0x1a8] sm:$0xff]  ;;  %v328_v28 = vld [vmem:[#allocation2 + $0x1b0] sm:$0xff]  ;;  %v329_v29 = vld [vmem:[#allocation2 + $0x1b8] sm:$0xff] }
  0x26   :  { %1870 = vmatpush3.bf16.msra.mxu0 %v1869_v27  ;;  %v1935_v27 = vpack.c.bf16 %v327_v26, %v326_v25  ;;  %v1938_v30 = vpack.c.bf16 %v329_v29, %v328_v28  ;;  %v330_v31 = vld [vmem:[#allocation2 + $0x1c0] sm:$0xff]  ;;  %v331_v32 = vld [vmem:[#allocation2 + $0x1c8] sm:$0xff]  ;;  %v332_v34 = vld [vmem:[#allocation2 + $0x1d0] sm:$0xff] }
  0x27   :  { %1871 = vmatprep.subr.bf16.mxu0 %v2177_v0  ;;  %v333_v35 = vld [vmem:[#allocation2 + $0x1d8] sm:$0xff]  ;;  %v334_v37 = vld [vmem:[#allocation2 + $0x1e0] sm:$0xff]  ;;  %v335_v38 = vld [vmem:[#allocation2 + $0x1e8] sm:$0xff] }
  0x28   :  { %1894 = vmatpush3.bf16.msra.mxu1 %v1893_v36  ;;  %v1944_v36 = vpack.c.bf16 %v333_v35, %v332_v34  ;;  %v1209_v40 = vld [vmem:[%s2382_s2 + $0x1] ss:$0 sm:$0xff]  ;;  %v422_v51 = vld [vmem:[#allocation2 + $0x210] sm:$0xff]  ;;  %v423_v53 = vld [vmem:[#allocation2 + $0x218] sm:$0xff] }
  0x29   :  { %1895 = vmatprep.subr.bf16.mxu1 %v2177_v0  ;;  %v420_v49 = vld [vmem:[#allocation2 + $0x200] sm:$0xff]  ;;  %v426_v58 = vld [vmem:[#allocation2 + $0x230] sm:$0xff]  ;;  %v521_v21 = vld [vmem:[#allocation2 + $0x298] sm:$0xff] }
  0x2a   :  { %1873 = vmatpush3.bf16.msra.mxu0 %v1872_v33  ;;  %v1941_v33 = vpack.c.bf16 %v331_v32, %v330_v31  ;;  %v424_v55 = vld [vmem:[#allocation2 + $0x220] sm:$0xff]  ;;  %v430_v2 = vld [vmem:[#allocation2 + $0x250] sm:$0xff] }
  0x2b   :  { %1874 = vmatprep.subr.bf16.mxu0 %v2177_v0  ;;  %v428_v61 = vld [vmem:[#allocation2 + $0x240] sm:$0xff]  ;;  %v520_v19 = vld [vmem:[#allocation2 + $0x290] sm:$0xff] }
  0x2c   :  { %1897 = vmatpush3.bf16.msra.mxu1 %v1896_v42  ;;  %v432_v5 = vld [vmem:[#allocation2 + $0x260] sm:$0xff]  ;;  %v524_v26 = vld [vmem:[#allocation2 + $0x2b0] sm:$0xff] }
  0x2d   :  { %1898 = vmatprep.subr.bf16.mxu1 %v2177_v0  ;;  %v1211_v8 = vld [vmem:[%s2382_s2 + $0x2] ss:$0 sm:$0xff]  ;;  %v528_v32 = vld [vmem:[#allocation2 + $0x2d0] sm:$0xff] }
  0x2e   :  { %1876 = vmatpush3.bf16.msra.mxu0 %v1875_v39  ;;  %v1947_v39 = vpack.c.bf16 %v335_v38, %v334_v37  ;;  %v518_v17 = vld [vmem:[#allocation2 + $0x280] sm:$0xff] }
  0x2f   :  { %1877 = vmatprep.subr.bf16.mxu0 %v2177_v0  ;;  %v522_v23 = vld [vmem:[#allocation2 + $0x2a0] sm:$0xff] }
  0x30   :  { %1900 = vmatpush3.bf16.msra.mxu1 %v1899_v46  ;;  %v336_v46 = vld [vmem:[#allocation2 + $0x1f0] sm:$0xff]  ;;  %v526_v29 = vld [vmem:[#allocation2 + $0x2c0] sm:$0xff] }
  0x31   :  { %1901 = vmatprep.subr.bf16.mxu1 %v2177_v0  ;;  %v530_v35 = vld [vmem:[#allocation2 + $0x2e0] sm:$0xff] }
  0x32   :  { %1879 = vmatpush3.bf16.msra.mxu0 %v1878_v45  ;;  %v1213_v38 = vld [vmem:[%s2382_s2 + $0x3] ss:$0 sm:$0xff] }
  0x33   :  { %1904 = vmatprep.subr.bf16.mxu0 %v2177_v0 }
  0x34   :  { %1903 = vmatpush3.bf16.msra.mxu1 %v1902_v50  ;;  %v421_v50 = vld [vmem:[#allocation2 + $0x208] sm:$0xff] }
  0x35   :  { %1469 = vmatmul.mubr.f32.vlgmr.msra.gmra.mrb[0].mxu0 %v28_v47  ;;  %1928 = vmatprep.subr.bf16.mxu1 %v2177_v0  ;;  %v337_v47 = vld [vmem:[#allocation2 + $0x1f8] sm:$0xff]  ;;  %v1953_v52 = vpack.c.bf16 %v421_v50, %v420_v49  ;;  %v615_v49 = vld [vmem:[#allocation2 + $0x310] sm:$0xff] }
  0x36   :  { %1538 = vmatprep.mubr.msk.f32.mxu0 %vm2178_vm0, %v2179_v1  ;;  %1906 = vmatpush3.bf16.msra.mxu0 %v1905_v54  ;;  %v1950_v48 = vpack.c.bf16 %v337_v47, %v336_v46  ;;  %v1956_v54 = vpack.c.bf16 %v423_v53, %v422_v51  ;;  %v613_v47 = vld [vmem:[#allocation2 + $0x300] sm:$0xff]  ;;  %v616_v51 = vld [vmem:[#allocation2 + $0x318] sm:$0xff] }
  0x37   :  { %1907 = vmatprep.subr.bf16.mxu0 %v2177_v0  ;;  %v617_v53 = vld [vmem:[#allocation2 + $0x320] sm:$0xff] }
  0x3a   :  { %1909 = vmatpush3.bf16.msra.mxu0 %v1908_v56  ;;  %v425_v56 = vld [vmem:[#allocation2 + $0x228] sm:$0xff] }
  0x3b   :  { %1910 = vmatprep.subr.bf16.mxu0 %v2177_v0  ;;  %v1959_v57 = vpack.c.bf16 %v425_v56, %v424_v55  ;;  %v619_v56 = vld [vmem:[#allocation2 + $0x330] sm:$0xff] }
  0x3e   :  { %1912 = vmatpush3.bf16.msra.mxu0 %v1911_v59  ;;  %v427_v59 = vld [vmem:[#allocation2 + $0x238] sm:$0xff] }
  0x3f   :  { %1913 = vmatprep.subr.bf16.mxu0 %v2177_v0  ;;  %v1962_v60 = vpack.c.bf16 %v427_v59, %v426_v58  ;;  %v621_v59 = vld [vmem:[#allocation2 + $0x340] sm:$0xff] }
  0x42   :  { %1915 = vmatpush3.bf16.msra.mxu0 %v1914_v62  ;;  %v429_v62 = vld [vmem:[#allocation2 + $0x248] sm:$0xff] }
  0x43   :  { %1916 = vmatprep.subr.bf16.mxu0 %v2177_v0  ;;  %v1965_v63 = vpack.c.bf16 %v429_v62, %v428_v61  ;;  %v623_v62 = vld [vmem:[#allocation2 + $0x350] sm:$0xff] }
  0x46   :  { %1918 = vmatpush3.bf16.msra.mxu0 %v1917_v3  ;;  %v431_v3 = vld [vmem:[#allocation2 + $0x258] sm:$0xff] }
  0x47   :  { %1919 = vmatprep.subr.bf16.mxu0 %v2177_v0  ;;  %v1968_v4 = vpack.c.bf16 %v431_v3, %v430_v2  ;;  %v625_v3 = vld [vmem:[#allocation2 + $0x360] sm:$0xff] }
  0x4a   :  { %1921 = vmatpush3.bf16.msra.mxu0 %v1920_v6  ;;  %v433_v6 = vld [vmem:[#allocation2 + $0x268] sm:$0xff] }
  0x4b   :  { %1922 = vmatprep.subr.bf16.mxu0 %v2177_v0  ;;  %v1971_v7 = vpack.c.bf16 %v433_v6, %v432_v5  ;;  %v1215_v6 = vld [vmem:[%s2382_s2 + $0x4] ss:$0 sm:$0xff] }
  0x4e   :  { %1924 = vmatpush3.bf16.msra.mxu0 %v1923_v9 }
  0x4f   :  { %1925 = vmatprep.subr.bf16.mxu0 %v2177_v0 }
  0x52   :  { %1927 = vmatpush3.bf16.msra.mxu0 %v1926_v18  ;;  %v519_v18 = vld [vmem:[#allocation2 + $0x288] sm:$0xff] }
  0x53   :  { %1952 = vmatprep.subr.bf16.mxu0 %v2177_v0  ;;  %v1977_v20 = vpack.c.bf16 %v519_v18, %v518_v17  ;;  %v713_v17 = vld [vmem:[#allocation2 + $0x390] sm:$0xff] }
 0x108   :  { %v118_v11 = vpop.f32.mrb[0].mxu0 }
 0x109   :  { %v119_v12 = vadd.f32 %v1207_v10, %v118_v11  ;;  %v1470_v13 = vpop.f32.mrb[1].mxu0 }
 0x10b   :  { %v123_v14 = vmul.f32 0.1, %v119_v12  ;;  %vm122_vm1 = vcmp.gt.f32.partialorder %v119_v12, 0.0 }
 0x10d   :  { %v124_v15 = vsel %vm122_vm1, %v119_v12, %v123_v14  ;;  %v434_v14 = vld [vmem:[#allocation2 + $0x270] sm:$0xff] }
 0x10e   :  { %1504 = vmatmul.mubr.f32.vlgmr.msra.gmra.mrb[0].mxu1 %v124_v15  ;;  %v435_v15 = vld [vmem:[#allocation2 + $0x278] sm:$0xff] }
 0x10f   :  { %1573 = vmatprep.mubr.msk.f32.mxu1 %vm2178_vm0, %v2179_v1  ;;  %1930 = vmatpush3.bf16.msra.mxu1 %v1929_v22  ;;  %v1974_v16 = vpack.c.bf16 %v435_v15, %v434_v14  ;;  %v1980_v22 = vpack.c.bf16 %v521_v21, %v520_v19  ;;  %v711_v15 = vld [vmem:[#allocation2 + $0x380] sm:$0xff]  ;;  %v714_v19 = vld [vmem:[#allocation2 + $0x398] sm:$0xff] }
 0x110   :  { %1931 = vmatprep.subr.bf16.mxu1 %v2177_v0  ;;  %v715_v21 = vld [vmem:[#allocation2 + $0x3a0] sm:$0xff] }
 0x113   :  { %1933 = vmatpush3.bf16.msra.mxu1 %v1932_v24  ;;  %v523_v24 = vld [vmem:[#allocation2 + $0x2a8] sm:$0xff] }
 0x114   :  { %1934 = vmatprep.subr.bf16.mxu1 %v2177_v0  ;;  %v1983_v25 = vpack.c.bf16 %v523_v24, %v522_v23  ;;  %v717_v24 = vld [vmem:[#allocation2 + $0x3b0] sm:$0xff] }
 0x117   :  { %1936 = vmatpush3.bf16.msra.mxu1 %v1935_v27  ;;  %v525_v27 = vld [vmem:[#allocation2 + $0x2b8] sm:$0xff] }
 0x118   :  { %1937 = vmatprep.subr.bf16.mxu1 %v2177_v0  ;;  %v1986_v28 = vpack.c.bf16 %v525_v27, %v524_v26  ;;  %v719_v27 = vld [vmem:[#allocation2 + $0x3c0] sm:$0xff] }
 0x11b   :  { %1939 = vmatpush3.bf16.msra.mxu1 %v1938_v30  ;;  %v527_v30 = vld [vmem:[#allocation2 + $0x2c8] sm:$0xff] }
 0x11c   :  { %1940 = vmatprep.subr.bf16.mxu1 %v2177_v0  ;;  %v1989_v31 = vpack.c.bf16 %v527_v30, %v526_v29  ;;  %v721_v30 = vld [vmem:[#allocation2 + $0x3d0] sm:$0xff] }
 0x11f   :  { %1942 = vmatpush3.bf16.msra.mxu1 %v1941_v33  ;;  %v529_v33 = vld [vmem:[#allocation2 + $0x2d8] sm:$0xff] }
 0x120   :  { %1943 = vmatprep.subr.bf16.mxu1 %v2177_v0  ;;  %v1992_v34 = vpack.c.bf16 %v529_v33, %v528_v32  ;;  %v723_v33 = vld [vmem:[#allocation2 + $0x3e0] sm:$0xff] }
 0x123   :  { %1945 = vmatpush3.bf16.msra.mxu1 %v1944_v36  ;;  %v531_v36 = vld [vmem:[#allocation2 + $0x2e8] sm:$0xff] }
 0x124   :  { %1946 = vmatprep.subr.bf16.mxu1 %v2177_v0  ;;  %v1995_v37 = vpack.c.bf16 %v531_v36, %v530_v35  ;;  %v1217_v36 = vld [vmem:[%s2382_s2 + $0x5] ss:$0 sm:$0xff] }
 0x127   :  { %1948 = vmatpush3.bf16.msra.mxu1 %v1947_v39 }
 0x128   :  { %1949 = vmatprep.subr.bf16.mxu1 %v2177_v0 }
 0x12b   :  { %1951 = vmatpush3.bf16.msra.mxu1 %v1950_v48  ;;  %v614_v48 = vld [vmem:[#allocation2 + $0x308] sm:$0xff] }
 0x12c   :  { %1976 = vmatprep.subr.bf16.mxu1 %v2177_v0  ;;  %v2001_v50 = vpack.c.bf16 %v614_v48, %v613_v47  ;;  %v812_v47 = vld [vmem:[#allocation2 + $0x418] sm:$0xff] }
 0x1e1   :  { %v216_v41 = vpop.f32.mrb[0].mxu1 }
 0x1e2   :  { %v217_v42 = vadd.f32 %v1209_v40, %v216_v41  ;;  %v1505_v43 = vpop.f32.mrb[1].mxu1 }
 0x1e4   :  { %vm220_vm2 = vcmp.gt.f32.partialorder %v217_v42, 0.0  ;;  %v221_v44 = vmul.f32 0.1, %v217_v42 }
 0x1e6   :  { %v222_v45 = vsel %vm220_vm2, %v217_v42, %v221_v44  ;;  %v532_v44 = vld [vmem:[#allocation2 + $0x2f0] sm:$0xff] }
 0x1e7   :  { %1539 = vmatmul.mubr.f32.vlgmr.msra.gmra.mrb[2].mxu0 %v222_v45  ;;  %v533_v45 = vld [vmem:[#allocation2 + $0x2f8] sm:$0xff] }
 0x1e8   :  { %1608 = vmatprep.mubr.msk.f32.mxu0 %vm2178_vm0, %v2179_v1  ;;  %1954 = vmatpush3.bf16.msra.mxu0 %v1953_v52  ;;  %v1998_v46 = vpack.c.bf16 %v533_v45, %v532_v44  ;;  %v2004_v52 = vpack.c.bf16 %v616_v51, %v615_v49  ;;  %v810_v44 = vld [vmem:[#allocation2 + $0x408] sm:$0xff]  ;;  %v811_v45 = vld [vmem:[#allocation2 + $0x410] sm:$0xff]  ;;  %v813_v49 = vld [vmem:[#allocation2 + $0x420] sm:$0xff] }
 0x1e9   :  { %1955 = vmatprep.subr.bf16.mxu0 %v2177_v0  ;;  %v2052_v48 = vpack.c.bf16 %v812_v47, %v811_v45  ;;  %v1009_v45 = vld [vmem:[#allocation2 + $0x518] sm:$0xff]  ;;  %v1010_v47 = vld [vmem:[#allocation2 + $0x520] sm:$0xff] }
 0x1ec   :  { %1957 = vmatpush3.bf16.msra.mxu0 %v1956_v54  ;;  %v618_v54 = vld [vmem:[#allocation2 + $0x328] sm:$0xff] }
 0x1ed   :  { %1958 = vmatprep.subr.bf16.mxu0 %v2177_v0  ;;  %v2007_v55 = vpack.c.bf16 %v618_v54, %v617_v53  ;;  %v816_v53 = vld [vmem:[#allocation2 + $0x438] sm:$0xff] }
 0x1f0   :  { %1960 = vmatpush3.bf16.msra.mxu0 %v1959_v57  ;;  %v620_v57 = vld [vmem:[#allocation2 + $0x338] sm:$0xff] }
 0x1f1   :  { %1961 = vmatprep.subr.bf16.mxu0 %v2177_v0  ;;  %v2010_v58 = vpack.c.bf16 %v620_v57, %v619_v56  ;;  %v818_v56 = vld [vmem:[#allocation2 + $0x448] sm:$0xff] }
 0x1f4   :  { %1963 = vmatpush3.bf16.msra.mxu0 %v1962_v60  ;;  %v622_v60 = vld [vmem:[#allocation2 + $0x348] sm:$0xff] }
 0x1f5   :  { %1964 = vmatprep.subr.bf16.mxu0 %v2177_v0  ;;  %v2013_v61 = vpack.c.bf16 %v622_v60, %v621_v59  ;;  %v820_v59 = vld [vmem:[#allocation2 + $0x458] sm:$0xff] }
 0x1f8   :  { %1966 = vmatpush3.bf16.msra.mxu0 %v1965_v63  ;;  %v624_v63 = vld [vmem:[#allocation2 + $0x358] sm:$0xff] }
 0x1f9   :  { %1967 = vmatprep.subr.bf16.mxu0 %v2177_v0  ;;  %v2016_v2 = vpack.c.bf16 %v624_v63, %v623_v62  ;;  %v822_v62 = vld [vmem:[#allocation2 + $0x468] sm:$0xff] }
 0x1fc   :  { %1969 = vmatpush3.bf16.msra.mxu0 %v1968_v4  ;;  %v626_v4 = vld [vmem:[#allocation2 + $0x368] sm:$0xff] }
 0x1fd   :  { %1970 = vmatprep.subr.bf16.mxu0 %v2177_v0  ;;  %v2019_v5 = vpack.c.bf16 %v626_v4, %v625_v3 }
 0x200   :  { %1972 = vmatpush3.bf16.msra.mxu0 %v1971_v7 }
 0x201   :  { %1973 = vmatprep.subr.bf16.mxu0 %v2177_v0 }
 0x204   :  { %1975 = vmatpush3.bf16.msra.mxu0 %v1974_v16  ;;  %v712_v16 = vld [vmem:[#allocation2 + $0x388] sm:$0xff] }
 0x205   :  { %2000 = vmatprep.subr.bf16.mxu0 %v2177_v0  ;;  %v2025_v18 = vpack.c.bf16 %v712_v16, %v711_v15  ;;  %v910_v15 = vld [vmem:[#allocation2 + $0x498] sm:$0xff] }
 0x2ba   :  { %v314_v9 = vpop.f32.mrb[2].mxu0 }
 0x2bb   :  { %v315_v10 = vadd.f32 %v1211_v8, %v314_v9  ;;  %v1540_v11 = vpop.f32.mrb[3].mxu0 }
 0x2bd   :  { %vm318_vm3 = vcmp.gt.f32.partialorder %v315_v10, 0.0  ;;  %v319_v12 = vmul.f32 0.1, %v315_v10 }
 0x2bf   :  { %v320_v13 = vsel %vm318_vm3, %v315_v10, %v319_v12  ;;  %v627_v12 = vld [vmem:[#allocation2 + $0x370] sm:$0xff] }
 0x2c0   :  { %1574 = vmatmul.mubr.f32.vlgmr.msra.gmra.mrb[2].mxu1 %v320_v13  ;;  %v628_v13 = vld [vmem:[#allocation2 + $0x378] sm:$0xff] }
 0x2c1   :  { %1643 = vmatprep.mubr.msk.f32.mxu1 %vm2178_vm0, %v2179_v1  ;;  %1978 = vmatpush3.bf16.msra.mxu1 %v1977_v20  ;;  %v2022_v14 = vpack.c.bf16 %v628_v13, %v627_v12  ;;  %v2028_v20 = vpack.c.bf16 %v714_v19, %v713_v17  ;;  %v908_v12 = vld [vmem:[#allocation2 + $0x488] sm:$0xff]  ;;  %v909_v13 = vld [vmem:[#allocation2 + $0x490] sm:$0xff]  ;;  %v911_v17 = vld [vmem:[#allocation2 + $0x4a0] sm:$0xff] }
 0x2c2   :  { %1979 = vmatprep.subr.bf16.mxu1 %v2177_v0  ;;  %v2076_v16 = vpack.c.bf16 %v910_v15, %v909_v13  ;;  %v1109_v13 = vld [vmem:[#allocation2 + $0x598] sm:$0xff]  ;;  %v1110_v15 = vld [vmem:[#allocation2 + $0x5a0] sm:$0xff] }
 0x2c5   :  { %1981 = vmatpush3.bf16.msra.mxu1 %v1980_v22  ;;  %v716_v22 = vld [vmem:[#allocation2 + $0x3a8] sm:$0xff] }
 0x2c6   :  { %1982 = vmatprep.subr.bf16.mxu1 %v2177_v0  ;;  %v2031_v23 = vpack.c.bf16 %v716_v22, %v715_v21  ;;  %v914_v21 = vld [vmem:[#allocation2 + $0x4b8] sm:$0xff] }
 0x2c9   :  { %1984 = vmatpush3.bf16.msra.mxu1 %v1983_v25  ;;  %v718_v25 = vld [vmem:[#allocation2 + $0x3b8] sm:$0xff] }
 0x2ca   :  { %1985 = vmatprep.subr.bf16.mxu1 %v2177_v0  ;;  %v2034_v26 = vpack.c.bf16 %v718_v25, %v717_v24  ;;  %v916_v24 = vld [vmem:[#allocation2 + $0x4c8] sm:$0xff] }
 0x2cd   :  { %1987 = vmatpush3.bf16.msra.mxu1 %v1986_v28  ;;  %v720_v28 = vld [vmem:[#allocation2 + $0x3c8] sm:$0xff] }
 0x2ce   :  { %1988 = vmatprep.subr.bf16.mxu1 %v2177_v0  ;;  %v2037_v29 = vpack.c.bf16 %v720_v28, %v719_v27  ;;  %v918_v27 = vld [vmem:[#allocation2 + $0x4d8] sm:$0xff] }
 0x2d1   :  { %1990 = vmatpush3.bf16.msra.mxu1 %v1989_v31  ;;  %v722_v31 = vld [vmem:[#allocation2 + $0x3d8] sm:$0xff] }
 0x2d2   :  { %1991 = vmatprep.subr.bf16.mxu1 %v2177_v0  ;;  %v2040_v32 = vpack.c.bf16 %v722_v31, %v721_v30  ;;  %v920_v30 = vld [vmem:[#allocation2 + $0x4e8] sm:$0xff] }
 0x2d5   :  { %1993 = vmatpush3.bf16.msra.mxu1 %v1992_v34  ;;  %v724_v34 = vld [vmem:[#allocation2 + $0x3e8] sm:$0xff] }
 0x2d6   :  { %1994 = vmatprep.subr.bf16.mxu1 %v2177_v0  ;;  %v2043_v35 = vpack.c.bf16 %v724_v34, %v723_v33 }
 0x2d9   :  { %1996 = vmatpush3.bf16.msra.mxu1 %v1995_v37 }
 0x2da   :  { %1997 = vmatprep.subr.bf16.mxu1 %v2177_v0 }
 0x2dd   :  { %1999 = vmatpush3.bf16.msra.mxu1 %v1998_v46 }
 0x2de   :  { %2024 = vmatprep.subr.bf16.mxu1 %v2177_v0 }
 0x393   :  { %v412_v39 = vpop.f32.mrb[2].mxu1 }
 0x394   :  { %v413_v40 = vadd.f32 %v1213_v38, %v412_v39  ;;  %v1575_v41 = vpop.f32.mrb[3].mxu1 }
 0x395   :  { %v726_v41 = vld [vmem:[#allocation2 + $0x3f8] sm:$0xff] }
 0x396   :  { %vm416_vm4 = vcmp.gt.f32.partialorder %v413_v40, 0.0  ;;  %v417_v42 = vmul.f32 0.1, %v413_v40 }
 0x398   :  { %v418_v43 = vsel %vm416_vm4, %v413_v40, %v417_v42  ;;  %v725_v40 = vld [vmem:[#allocation2 + $0x3f0] sm:$0xff] }
 0x399   :  { %1609 = vmatmul.mubr.f32.vlgmr.msra.gmra.mrb[4].mxu0 %v418_v43  ;;  %v2046_v42 = vpack.c.bf16 %v726_v41, %v725_v40  ;;  %v809_v43 = vld [vmem:[#allocation2 + $0x400] sm:$0xff] }
 0x39a   :  { %1678 = vmatprep.mubr.msk.f32.mxu0 %vm2178_vm0, %v2179_v1  ;;  %2002 = vmatpush3.bf16.msra.mxu0 %v2001_v50  ;;  %v2049_v46 = vpack.c.bf16 %v810_v44, %v809_v43  ;;  %v814_v50 = vld [vmem:[#allocation2 + $0x428] sm:$0xff]  ;;  %v1006_v41 = vld [vmem:[#allocation2 + $0x500] sm:$0xff]  ;;  %v1008_v43 = vld [vmem:[#allocation2 + $0x510] sm:$0xff] }
 0x39b   :  { %2003 = vmatprep.subr.bf16.mxu0 %v2177_v0  ;;  %v2055_v51 = vpack.c.bf16 %v814_v50, %v813_v49  ;;  %v1012_v50 = vld [vmem:[#allocation2 + $0x530] sm:$0xff] }
 0x39e   :  { %2005 = vmatpush3.bf16.msra.mxu0 %v2004_v52  ;;  %v815_v52 = vld [vmem:[#allocation2 + $0x430] sm:$0xff] }
 0x39f   :  { %2006 = vmatprep.subr.bf16.mxu0 %v2177_v0  ;;  %v2058_v54 = vpack.c.bf16 %v816_v53, %v815_v52  ;;  %v1014_v53 = vld [vmem:[#allocation2 + $0x540] sm:$0xff] }
 0x3a2   :  { %2008 = vmatpush3.bf16.msra.mxu0 %v2007_v55  ;;  %v817_v55 = vld [vmem:[#allocation2 + $0x440] sm:$0xff] }
 0x3a3   :  { %2009 = vmatprep.subr.bf16.mxu0 %v2177_v0  ;;  %v2061_v57 = vpack.c.bf16 %v818_v56, %v817_v55  ;;  %v1016_v56 = vld [vmem:[#allocation2 + $0x550] sm:$0xff] }
 0x3a6   :  { %2011 = vmatpush3.bf16.msra.mxu0 %v2010_v58  ;;  %v819_v58 = vld [vmem:[#allocation2 + $0x450] sm:$0xff] }
 0x3a7   :  { %2012 = vmatprep.subr.bf16.mxu0 %v2177_v0  ;;  %v2064_v60 = vpack.c.bf16 %v820_v59, %v819_v58  ;;  %v1018_v59 = vld [vmem:[#allocation2 + $0x560] sm:$0xff] }
 0x3aa   :  { %2014 = vmatpush3.bf16.msra.mxu0 %v2013_v61  ;;  %v821_v61 = vld [vmem:[#allocation2 + $0x460] sm:$0xff] }
 0x3ab   :  { %2015 = vmatprep.subr.bf16.mxu0 %v2177_v0  ;;  %v2067_v63 = vpack.c.bf16 %v822_v62, %v821_v61  ;;  %v1223_v62 = vld [vmem:[%s2382_s2 + $0x8] ss:$0 sm:$0xff] }
 0x3ae   :  { %2017 = vmatpush3.bf16.msra.mxu0 %v2016_v2  ;;  %v1219_v2 = vld [vmem:[%s2382_s2 + $0x6] ss:$0 sm:$0xff] }
 0x3af   :  { %2018 = vmatprep.subr.bf16.mxu0 %v2177_v0 }
 0x3b2   :  { %2020 = vmatpush3.bf16.msra.mxu0 %v2019_v5 }
 0x3b3   :  { %2021 = vmatprep.subr.bf16.mxu0 %v2177_v0 }
 0x3b6   :  { %2023 = vmatpush3.bf16.msra.mxu0 %v2022_v14 }
 0x3b7   :  { %2048 = vmatprep.subr.bf16.mxu0 %v2177_v0 }
 0x46c   :  { %v510_v7 = vpop.f32.mrb[4].mxu0 }
 0x46d   :  { %v511_v8 = vadd.f32 %v1215_v6, %v510_v7  ;;  %v1610_v9 = vpop.f32.mrb[5].mxu0 }
 0x46e   :  { %v824_v9 = vld [vmem:[#allocation2 + $0x478] sm:$0xff] }
 0x46f   :  { %vm514_vm5 = vcmp.gt.f32.partialorder %v511_v8, 0.0  ;;  %v515_v10 = vmul.f32 0.1, %v511_v8 }
 0x471   :  { %v516_v11 = vsel %vm514_vm5, %v511_v8, %v515_v10  ;;  %v823_v8 = vld [vmem:[#allocation2 + $0x470] sm:$0xff] }
 0x472   :  { %1644 = vmatmul.mubr.f32.vlgmr.msra.gmra.mrb[4].mxu1 %v516_v11  ;;  %v2070_v10 = vpack.c.bf16 %v824_v9, %v823_v8  ;;  %v907_v11 = vld [vmem:[#allocation2 + $0x480] sm:$0xff] }
 0x473   :  { %1713 = vmatprep.mubr.msk.f32.mxu1 %vm2178_vm0, %v2179_v1  ;;  %2026 = vmatpush3.bf16.msra.mxu1 %v2025_v18  ;;  %v2073_v14 = vpack.c.bf16 %v908_v12, %v907_v11  ;;  %v912_v18 = vld [vmem:[#allocation2 + $0x4a8] sm:$0xff]  ;;  %v1106_v9 = vld [vmem:[#allocation2 + $0x580] sm:$0xff]  ;;  %v1108_v11 = vld [vmem:[#allocation2 + $0x590] sm:$0xff] }
 0x474   :  { %2027 = vmatprep.subr.bf16.mxu1 %v2177_v0  ;;  %v2079_v19 = vpack.c.bf16 %v912_v18, %v911_v17  ;;  %v1113_v18 = vld [vmem:[#allocation2 + $0x5b8] sm:$0xff] }
 0x477   :  { %2029 = vmatpush3.bf16.msra.mxu1 %v2028_v20  ;;  %v913_v20 = vld [vmem:[#allocation2 + $0x4b0] sm:$0xff] }
 0x478   :  { %2030 = vmatprep.subr.bf16.mxu1 %v2177_v0  ;;  %v2082_v22 = vpack.c.bf16 %v914_v21, %v913_v20  ;;  %v1114_v20 = vld [vmem:[#allocation2 + $0x5c0] sm:$0xff]  ;;  %v1115_v21 = vld [vmem:[#allocation2 + $0x5c8] sm:$0xff] }
 0x47b   :  { %2032 = vmatpush3.bf16.msra.mxu1 %v2031_v23  ;;  %v915_v23 = vld [vmem:[#allocation2 + $0x4c0] sm:$0xff] }
 0x47c   :  { %2033 = vmatprep.subr.bf16.mxu1 %v2177_v0  ;;  %v2085_v25 = vpack.c.bf16 %v916_v24, %v915_v23  ;;  %v1116_v23 = vld [vmem:[#allocation2 + $0x5d0] sm:$0xff]  ;;  %v1117_v24 = vld [vmem:[#allocation2 + $0x5d8] sm:$0xff] }
 0x47f   :  { %2035 = vmatpush3.bf16.msra.mxu1 %v2034_v26  ;;  %v917_v26 = vld [vmem:[#allocation2 + $0x4d0] sm:$0xff] }
 0x480   :  { %2036 = vmatprep.subr.bf16.mxu1 %v2177_v0  ;;  %v2088_v28 = vpack.c.bf16 %v918_v27, %v917_v26  ;;  %v1118_v26 = vld [vmem:[#allocation2 + $0x5e0] sm:$0xff]  ;;  %v1119_v27 = vld [vmem:[#allocation2 + $0x5e8] sm:$0xff] }
 0x483   :  { %2038 = vmatpush3.bf16.msra.mxu1 %v2037_v29  ;;  %v919_v29 = vld [vmem:[#allocation2 + $0x4e0] sm:$0xff] }
 0x484   :  { %2039 = vmatprep.subr.bf16.mxu1 %v2177_v0  ;;  %v2091_v31 = vpack.c.bf16 %v920_v30, %v919_v29  ;;  %v1225_v29 = vld [vmem:[%s2382_s2 + $0x9] ss:$0 sm:$0xff] }
 0x487   :  { %2041 = vmatpush3.bf16.msra.mxu1 %v2040_v32  ;;  %v1221_v32 = vld [vmem:[%s2382_s2 + $0x7] ss:$0 sm:$0xff] }
 0x488   :  { %2042 = vmatprep.subr.bf16.mxu1 %v2177_v0 }
 0x48b   :  { %2044 = vmatpush3.bf16.msra.mxu1 %v2043_v35 }
 0x48c   :  { %2045 = vmatprep.subr.bf16.mxu1 %v2177_v0 }
 0x48f   :  { %2047 = vmatpush3.bf16.msra.mxu1 %v2046_v42  ;;  %v1007_v42 = vld [vmem:[#allocation2 + $0x508] sm:$0xff] }
 0x490   :  { %2072 = vmatprep.subr.bf16.mxu1 %v2177_v0  ;;  %v2097_v44 = vpack.c.bf16 %v1007_v42, %v1006_v41 }
 0x545   :  { %v608_v37 = vpop.f32.mrb[4].mxu1 }
 0x546   :  { %v609_v38 = vadd.f32 %v1217_v36, %v608_v37  ;;  %v1645_v39 = vpop.f32.mrb[5].mxu1 }
 0x547   :  { %v922_v39 = vld [vmem:[#allocation2 + $0x4f8] sm:$0xff] }
 0x548   :  { %1679 = vmatmul.mubr.f32.vlgmr.msra.gmra.mrb[6].mxu0 %v609_v38  ;;  %v921_v38 = vld [vmem:[#allocation2 + $0x4f0] sm:$0xff] }
 0x549   :  { %1748 = vmatprep.mubr.msk.f32.mxu0 %vm2178_vm0, %v2179_v1  ;;  %2050 = vmatpush3.bf16.msra.mxu0 %v2049_v46  ;;  %v2094_v40 = vpack.c.bf16 %v922_v39, %v921_v38  ;;  %v2100_v46 = vpack.c.bf16 %v1009_v45, %v1008_v43  ;;  %v1230_v43 = vld [vmem:[%s2382_s2 + $0xb] ss:$0 sm:$0xff] }
 0x54a   :  { %2051 = vmatprep.subr.bf16.mxu0 %v2177_v0 }
 0x54d   :  { %2053 = vmatpush3.bf16.msra.mxu0 %v2052_v48  ;;  %v1011_v48 = vld [vmem:[#allocation2 + $0x528] sm:$0xff] }
 0x54e   :  { %2054 = vmatprep.subr.bf16.mxu0 %v2177_v0  ;;  %v2103_v49 = vpack.c.bf16 %v1011_v48, %v1010_v47 }
 0x551   :  { %2056 = vmatpush3.bf16.msra.mxu0 %v2055_v51  ;;  %v1013_v51 = vld [vmem:[#allocation2 + $0x538] sm:$0xff] }
 0x552   :  { %2057 = vmatprep.subr.bf16.mxu0 %v2177_v0  ;;  %v2106_v52 = vpack.c.bf16 %v1013_v51, %v1012_v50 }
 0x555   :  { %2059 = vmatpush3.bf16.msra.mxu0 %v2058_v54  ;;  %v1015_v54 = vld [vmem:[#allocation2 + $0x548] sm:$0xff] }
 0x556   :  { %2060 = vmatprep.subr.bf16.mxu0 %v2177_v0  ;;  %v2109_v55 = vpack.c.bf16 %v1015_v54, %v1014_v53 }
 0x559   :  { %2062 = vmatpush3.bf16.msra.mxu0 %v2061_v57  ;;  %v1017_v57 = vld [vmem:[#allocation2 + $0x558] sm:$0xff] }
 0x55a   :  { %2063 = vmatprep.subr.bf16.mxu0 %v2177_v0  ;;  %v2112_v58 = vpack.c.bf16 %v1017_v57, %v1016_v56 }
 0x55d   :  { %2065 = vmatpush3.bf16.msra.mxu0 %v2064_v60  ;;  %v1019_v60 = vld [vmem:[#allocation2 + $0x568] sm:$0xff] }
 0x55e   :  { %2066 = vmatprep.subr.bf16.mxu0 %v2177_v0  ;;  %v2115_v61 = vpack.c.bf16 %v1019_v60, %v1018_v59 }
 0x561   :  { %2068 = vmatpush3.bf16.msra.mxu0 %v2067_v63 }
 0x562   :  { %2069 = vmatprep.subr.bf16.mxu0 %v2177_v0 }
 0x565   :  { %2071 = vmatpush3.bf16.msra.mxu0 %v2070_v10  ;;  %v1107_v10 = vld [vmem:[#allocation2 + $0x588] sm:$0xff] }
 0x566   :  { %2096 = vmatprep.subr.bf16.mxu0 %v2177_v0  ;;  %v2121_v12 = vpack.c.bf16 %v1107_v10, %v1106_v9 }
 0x61b   :  { %v703_v3 = vpop.f32.mrb[6].mxu0 }
 0x61c   :  { %v704_v4 = vadd.f32 %v1219_v2, %v703_v3  ;;  %v1680_v5 = vpop.f32.mrb[7].mxu0 }
 0x61e   :  { %vm707_vm6 = vcmp.gt.f32.partialorder %v704_v4, 0.0  ;;  %v708_v6 = vmul.f32 0.1, %v704_v4 }
 0x620   :  { %v709_v7 = vsel %vm707_vm6, %v704_v4, %v708_v6  ;;  %v1020_v6 = vld [vmem:[#allocation2 + $0x570] sm:$0xff] }
 0x621   :  { %1714 = vmatmul.mubr.f32.vlgmr.msra.gmra.mrb[6].mxu1 %v709_v7  ;;  %v1021_v7 = vld [vmem:[#allocation2 + $0x578] sm:$0xff] }
 0x622   :  { %1783 = vmatprep.mubr.msk.f32.mxu1 %vm2178_vm0, %v2179_v1  ;;  %2074 = vmatpush3.bf16.msra.mxu1 %v2073_v14  ;;  %v2118_v8 = vpack.c.bf16 %v1021_v7, %v1020_v6  ;;  %v2124_v14 = vpack.c.bf16 %v1109_v13, %v1108_v11 }
 0x623   :  { %2075 = vmatprep.subr.bf16.mxu1 %v2177_v0 }
 0x626   :  { %2077 = vmatpush3.bf16.msra.mxu1 %v2076_v16  ;;  %v1111_v16 = vld [vmem:[#allocation2 + $0x5a8] sm:$0xff] }
 0x627   :  { %2078 = vmatprep.subr.bf16.mxu1 %v2177_v0  ;;  %v2127_v17 = vpack.c.bf16 %v1111_v16, %v1110_v15 }
 0x62a   :  { %2080 = vmatpush3.bf16.msra.mxu1 %v2079_v19 }
 0x62b   :  { %2081 = vmatprep.subr.bf16.mxu1 %v2177_v0 }
 0x62e   :  { %2083 = vmatpush3.bf16.msra.mxu1 %v2082_v22  ;;  %v2133_v22 = vpack.c.bf16 %v1115_v21, %v1114_v20 }
 0x62f   :  { %2084 = vmatprep.subr.bf16.mxu1 %v2177_v0 }
 0x632   :  { %2086 = vmatpush3.bf16.msra.mxu1 %v2085_v25  ;;  %v2136_v25 = vpack.c.bf16 %v1117_v24, %v1116_v23 }
 0x633   :  { %2087 = vmatprep.subr.bf16.mxu1 %v2177_v0 }
 0x636   :  { %2089 = vmatpush3.bf16.msra.mxu1 %v2088_v28  ;;  %v2139_v28 = vpack.c.bf16 %v1119_v27, %v1118_v26 }
 0x637   :  { %2090 = vmatprep.subr.bf16.mxu1 %v2177_v0 }
 0x63a   :  { %2092 = vmatpush3.bf16.msra.mxu1 %v2091_v31 }
 0x63b   :  { %2093 = vmatprep.subr.bf16.mxu1 %v2177_v0 }
 0x63e   :  { %2095 = vmatpush3.bf16.msra.mxu1 %v2094_v40 }
 0x63f   :  { %2120 = vmatprep.subr.bf16.mxu1 %v2177_v0 }
 0x6f4   :  { %v801_v33 = vpop.f32.mrb[6].mxu1 }
 0x6f5   :  { %v802_v34 = vadd.f32 %v1221_v32, %v801_v33  ;;  %v1715_v35 = vpop.f32.mrb[7].mxu1 }
 0x6f6   :  { %v1120_v35 = vld [vmem:[#allocation2 + $0x5f0] sm:$0xff] }
 0x6f7   :  { %vm805_vm7 = vcmp.gt.f32.partialorder %v802_v34, 0.0  ;;  %v806_v36 = vmul.f32 0.1, %v802_v34 }
 0x6f9   :  { %v807_v37 = vsel %vm805_vm7, %v802_v34, %v806_v36  ;;  %v1121_v36 = vld [vmem:[#allocation2 + $0x5f8] sm:$0xff] }
 0x6fa   :  { %1749 = vmatmul.mubr.f32.vlgmr.msra.gmra.mrb[8].mxu0 %v807_v37  ;;  %v2142_v37 = vpack.c.bf16 %v1121_v36, %v1120_v35 }
 0x6fb   :  { %1818 = vmatprep.mubr.msk.f32.mxu0 %vm2178_vm0, %v2179_v1  ;;  %2098 = vmatpush3.bf16.msra.mxu0 %v2097_v44 }
 0x6fc   :  { %2099 = vmatprep.subr.bf16.mxu0 %v2177_v0 }
 0x6ff   :  { %2101 = vmatpush3.bf16.msra.mxu0 %v2100_v46 }
 0x700   :  { %2102 = vmatprep.subr.bf16.mxu0 %v2177_v0 }
 0x703   :  { %2104 = vmatpush3.bf16.msra.mxu0 %v2103_v49 }
 0x704   :  { %2105 = vmatprep.subr.bf16.mxu0 %v2177_v0 }
 0x707   :  { %2107 = vmatpush3.bf16.msra.mxu0 %v2106_v52 }
 0x708   :  { %2108 = vmatprep.subr.bf16.mxu0 %v2177_v0 }
 0x70b   :  { %2110 = vmatpush3.bf16.msra.mxu0 %v2109_v55 }
 0x70c   :  { %2111 = vmatprep.subr.bf16.mxu0 %v2177_v0 }
 0x70f   :  { %2113 = vmatpush3.bf16.msra.mxu0 %v2112_v58 }
 0x710   :  { %2114 = vmatprep.subr.bf16.mxu0 %v2177_v0 }
 0x713   :  { %2116 = vmatpush3.bf16.msra.mxu0 %v2115_v61 }
 0x714   :  { %2117 = vmatprep.subr.bf16.mxu0 %v2177_v0 }
 0x717   :  { %2119 = vmatpush3.bf16.msra.mxu0 %v2118_v8 }
 0x7cd   :  { %v899_v63 = vpop.f32.mrb[8].mxu0 }
 0x7ce   :  { %v900_v2 = vadd.f32 %v1223_v62, %v899_v63  ;;  %v1750_v3 = vpop.f32.mrb[9].mxu0 }
 0x7d0   :  { %vm903_vm8 = vcmp.gt.f32.partialorder %v900_v2, 0.0  ;;  %v904_v4 = vmul.f32 0.1, %v900_v2 }
 0x7d2   :  { %v905_v5 = vsel %vm903_vm8, %v900_v2, %v904_v4 }
 0x7d3   :  { %1784 = vmatmul.mubr.f32.vlgmr.msra.gmra.mrb[8].mxu1 %v905_v5 }
 0x7d4   :  { %1853 = vmatprep.mubr.msk.f32.mxu1 %vm2178_vm0, %v2179_v1  ;;  %2122 = vmatpush3.bf16.msra.mxu1 %v2121_v12  ;;  %v1112_v1 = vld [vmem:[#allocation2 + $0x5b0] sm:$0xff] }
 0x7d5   :  { %2123 = vmatprep.subr.bf16.mxu1 %v2177_v0  ;;  %v2130_v19 = vpack.c.bf16 %v1113_v18, %v1112_v1 }
 0x7d8   :  { %2125 = vmatpush3.bf16.msra.mxu1 %v2124_v14 }
 0x7d9   :  { %2126 = vmatprep.subr.bf16.mxu1 %v2177_v0 }
 0x7dc   :  { %2128 = vmatpush3.bf16.msra.mxu1 %v2127_v17 }
 0x7dd   :  { %2129 = vmatprep.subr.bf16.mxu1 %v2177_v0 }
 0x7e0   :  { %2131 = vmatpush3.bf16.msra.mxu1 %v2130_v19 }
 0x7e1   :  { %2132 = vmatprep.subr.bf16.mxu1 %v2177_v0 }
 0x7e4   :  { %2134 = vmatpush3.bf16.msra.mxu1 %v2133_v22 }
 0x7e5   :  { %2135 = vmatprep.subr.bf16.mxu1 %v2177_v0 }
 0x7e8   :  { %2137 = vmatpush3.bf16.msra.mxu1 %v2136_v25 }
 0x7e9   :  { %2138 = vmatprep.subr.bf16.mxu1 %v2177_v0 }
 0x7ec   :  { %2140 = vmatpush3.bf16.msra.mxu1 %v2139_v28 }
 0x7ed   :  { %2141 = vmatprep.subr.bf16.mxu1 %v2177_v0  ;;  %v1227_v0 = vld [vmem:[%s2382_s2 + $0xa] ss:$0 sm:$0xff] }
 0x7f0   :  { %2143 = vmatpush3.bf16.msra.mxu1 %v2142_v37 }
 0x8a6   :  { %v997_v30 = vpop.f32.mrb[8].mxu1 }
 0x8a7   :  { %v998_v31 = vadd.f32 %v1225_v29, %v997_v30  ;;  %v1785_v32 = vpop.f32.mrb[9].mxu1 }
 0x8a9   :  { %vm1001_vm9 = vcmp.gt.f32.partialorder %v998_v31, 0.0  ;;  %v1002_v33 = vmul.f32 0.1, %v998_v31 }
 0x8ab   :  { %v1003_v34 = vsel %vm1001_vm9, %v998_v31, %v1002_v33 }
 0x8ac   :  { %1004 = vst [vmem:[%s2383_s3] sm:$0xff] %v1003_v34  ;;  %1819 = vmatmul.mubr.f32.vlgmr.msra.gmra.mrb[10].mxu0 %v1003_v34 }
 0x97f   :  { %v1096_v38 = vpop.f32.mrb[10].mxu0 }
 0x980   :  { %v1097_v39 = vadd.f32 %v1227_v0, %v1096_v38  ;;  %v1820_v40 = vpop.f32.mrb[11].mxu0 }
 0x982   :  { %vm1100_vm10 = vcmp.gt.f32.partialorder %v1097_v39, 0.0  ;;  %v1101_v41 = vmul.f32 0.1, %v1097_v39 }
 0x984   :  { %v1102_v42 = vsel %vm1100_vm10, %v1097_v39, %v1101_v41 }
 0x985   :  { %1228 = vst [vmem:[%s2383_s3 + $0x8] sm:$0xff] %v1102_v42  ;;  %1854 = vmatmul.mubr.f32.vlgmr.msra.gmra.mrb[10].mxu1 %v1102_v42 }
 0xa58   :  { %v1196_v44 = vpop.f32.mrb[10].mxu1 }
 0xa59   :  { %v1197_v45 = vadd.f32 %v1230_v43, %v1196_v44  ;;  %v1855_v46 = vpop.f32.mrb[11].mxu1 }
 0xa5b   :  { %1231 = vst [vmem:[%s2383_s3 + $0x10] sm:$0xff] %v1197_v45 }
 0xa5c   :  { %1206 = vsyncpa [#allocation3], 1 }

</bundles_post_ra>
